<compile_context>
chip_gen: v7x
topology: tpu7x:2x2x1
jax: 0.10.0
libtpu: 0.0.40
codegen_flags: <defaults>
</compile_context>

<pallas_src>
import jax
import jax.numpy as jnp
from jax.experimental import pallas as pl
from jax.experimental.pallas import tpu as pltpu

OUT_PAD = 8    # padded width of the final layer (true width is 3)
TRUE_OUT = 3


def _round_up(n, m):
    return (n + m - 1) // m * m


def dqn_kernel(x_ref,
               w1_ref, b1_ref,
               w2_ref, b2_ref,
               w3_ref, b3_ref,
               w4_ref, b4_ref,
               w5_ref, b5_ref,
               o_ref):
    """One batch tile of the 5-layer MLP. Weights/biases are VMEM-resident."""
    # Hoisted loads: each weight / bias is read exactly once per grid step.
    w1 = w1_ref[...]; b1 = b1_ref[...]
    w2 = w2_ref[...]; b2 = b2_ref[...]
    w3 = w3_ref[...]; b3 = b3_ref[...]
    w4 = w4_ref[...]; b4 = b4_ref[...]
    w5 = w5_ref[...]; b5 = b5_ref[...]

    # Layer 1 in f32 (tiny K=4, N=10; keeps input fidelity for argmax parity).
    h = jnp.dot(x_ref[...], w1, preferred_element_type=jnp.float32) + b1
    h = jnp.maximum(h, 0.0).astype(jnp.bfloat16)
    # Layers 2-5: bf16 MXU operands, f32 accumulation / bias / ReLU.
    h = jnp.dot(h, w2, preferred_element_type=jnp.float32) + b2
    h = jnp.maximum(h, 0.0).astype(jnp.bfloat16)
    h = jnp.dot(h, w3, preferred_element_type=jnp.float32) + b3
    h = jnp.maximum(h, 0.0).astype(jnp.bfloat16)
    h = jnp.dot(h, w4, preferred_element_type=jnp.float32) + b4
    h = jnp.maximum(h, 0.0).astype(jnp.bfloat16)
    h = jnp.dot(h, w5, preferred_element_type=jnp.float32) + b5
    o_ref[...] = h.astype(o_ref.dtype)


def dqn_forward(x, params, tile_b=1024):
    """x: (B, 4) float32. params: list of (W, b), W (in, out), b (1, out).

    Returns (B, 3) float32 Q-values.
    """
    B, F = x.shape
    b16 = _round_up(max(B, 1), 16)
    tile_b = min(_round_up(tile_b, 16), b16)
    # Ensure >=2 grid steps when the batch allows, so the "parallel" grid axis
    # can be sharded across both TensorCores on v7x (no effect on v5e/v6e).
    if tile_b >= b16 and b16 >= 32:
        tile_b = _round_up((b16 + 1) // 2, 16)
    b_pad = _round_up(B, tile_b)

    # Pad the batch to a whole number of tiles; x stays f32.
    x_pad = jnp.zeros((b_pad, F), jnp.float32).at[:B].set(x.astype(jnp.float32))

    flat = []
    in_specs = [pl.BlockSpec((tile_b, F), lambda i: (i, 0))]
    n_layers = len(params)
    for li, (w, b) in enumerate(params):
        w = w.astype(jnp.float32 if li == 0 else jnp.bfloat16)
        b = b.astype(jnp.float32)
        if li == n_layers - 1:
            # Pad the output layer from 3 to 8 lanes (cheap, contiguous stores;
            # ~16x less HBM writeback than a 128-lane pad).
            w = jnp.zeros((w.shape[0], OUT_PAD), w.dtype).at[:, :w.shape[1]].set(w)
            b = jnp.zeros((1, OUT_PAD), jnp.float32).at[:, :b.shape[1]].set(b)
        flat.extend([w, b])
        # Full-array blocks with constant index_map: weights stay VMEM-resident
        # and are not re-DMA'd across grid steps.
        in_specs.append(pl.BlockSpec(w.shape, lambda i: (0, 0)))
        in_specs.append(pl.BlockSpec(b.shape, lambda i: (0, 0)))

    out = pl.pallas_call(
        dqn_kernel,
        out_shape=jax.ShapeDtypeStruct((b_pad, OUT_PAD), jnp.float32),
        grid=(b_pad // tile_b,),
        in_specs=in_specs,
        out_specs=pl.BlockSpec((tile_b, OUT_PAD), lambda i: (i, 0)),
        compiler_params=pltpu.CompilerParams(
            dimension_semantics=("parallel",)),
    )(x_pad, *flat)
    # TODO(synk): for a full DQN training step, fuse the target-network forward
    # and TD-target max into this same pallas_call to amortize launch overhead.
    return out[:B, :TRUE_OUT]


def init_params(key):
    """Deterministic init mimicking PyTorch Linear default (uniform +-1/sqrt(fan_in))."""
    dims = [(4, 10), (10, 100), (100, 50), (50, 10), (10, 3)]
    params = []
    for (fan_in, fan_out) in dims:
        key, kw, kb = jax.random.split(key, 3)
        bound = 1.0 / jnp.sqrt(jnp.float32(fan_in))
        w = jax.random.uniform(kw, (fan_in, fan_out), jnp.float32, -bound, bound)
        b = jax.random.uniform(kb, (1, fan_out), jnp.float32, -bound, bound)
        params.append((w, b))
    return params


def dqn_reference_f32(x, params):
    h = x
    for i, (w, b) in enumerate(params):
        h = h @ w + b
        if i < len(params) - 1:
            h = jnp.maximum(h, 0.0)
    return h


def dqn_reference_mixed(x, params):
    """Matches the kernel's precision: layer 1 f32; layers 2-5 bf16 operands, f32 acc."""
    w1, b1 = params[0]
    h = jnp.dot(x.astype(jnp.float32), w1.astype(jnp.float32),
                preferred_element_type=jnp.float32) + b1.astype(jnp.float32)
    h = jnp.maximum(h, 0.0).astype(jnp.bfloat16)
    for i, (w, b) in enumerate(params[1:], start=1):
        h = jnp.dot(h, w.astype(jnp.bfloat16),
                    preferred_element_type=jnp.float32) + b.astype(jnp.float32)
        if i < len(params) - 1:
            h = jnp.maximum(h, 0.0).astype(jnp.bfloat16)
    return h


if __name__ == "__main__":
    key = jax.random.PRNGKey(0)
    kx, kp, kx2 = jax.random.split(key, 3)

    params = init_params(kp)
    fwd = jax.jit(dqn_forward, static_argnames=("tile_b",))

    # Small batch (single grid step).
    x_small = jax.random.normal(kx, (8, 4), jnp.float32)
    out_small = jax.block_until_ready(fwd(x_small, params))
    assert out_small.shape == (8, 3), out_small.shape

    # Larger, non-tile-multiple batch exercises the grid, padding and the
    # >=2-grid-step (megacore) path.
    x_big = jax.random.normal(kx2, (300, 4), jnp.float32)
    out_big = jax.block_until_ready(fwd(x_big, params))
    assert out_big.shape == (300, 3), out_big.shape

    for x, out in ((x_small, out_small), (x_big, out_big)):
        ref_mixed = dqn_reference_mixed(x, params)
        ref_f32 = dqn_reference_f32(x, params)
        assert jnp.allclose(out, ref_mixed, atol=2e-3, rtol=2e-3), "mismatch vs mixed-precision reference"
        assert jnp.allclose(out, ref_f32, atol=1e-1, rtol=1e-1), "mismatch vs f32 reference"

    print("KERNEL_OK")
</pallas_src>

<mosaic_0001>
module attributes {stable_mosaic.version = 11 : i64} {
  func.func @dqn_kernel(%arg0: i32, %arg1: memref<16x4xf32, #tpu.memory_space<vmem>>, %arg2: memref<4x10xf32, #tpu.memory_space<vmem>>, %arg3: memref<1x10xf32, #tpu.memory_space<vmem>>, %arg4: memref<10x100xbf16, #tpu.memory_space<vmem>>, %arg5: memref<1x100xf32, #tpu.memory_space<vmem>>, %arg6: memref<100x50xbf16, #tpu.memory_space<vmem>>, %arg7: memref<1x50xf32, #tpu.memory_space<vmem>>, %arg8: memref<50x10xbf16, #tpu.memory_space<vmem>>, %arg9: memref<1x10xf32, #tpu.memory_space<vmem>>, %arg10: memref<10x8xbf16, #tpu.memory_space<vmem>>, %arg11: memref<1x8xf32, #tpu.memory_space<vmem>>, %arg12: memref<16x8xf32, #tpu.memory_space<vmem>>) attributes {dimension_semantics = [#tpu.dimension_semantics<parallel>], iteration_bounds = array<i64: 1>, scalar_prefetch = 0 : i64, scratch_operands = 0 : i64, tpu.core_type = #tpu.core_type<tc>, window_params = [{transform_indices = @transform_0, window_bounds = array<i64: 16, 4>}, {pipeline_mode = #tpu.pipeline_mode<synchronous>, transform_indices = @transform_1, window_bounds = array<i64: 4, 10>}, {pipeline_mode = #tpu.pipeline_mode<synchronous>, transform_indices = @transform_2, window_bounds = array<i64: 1, 10>}, {pipeline_mode = #tpu.pipeline_mode<synchronous>, transform_indices = @transform_3, window_bounds = array<i64: 10, 100>}, {pipeline_mode = #tpu.pipeline_mode<synchronous>, transform_indices = @transform_4, window_bounds = array<i64: 1, 100>}, {pipeline_mode = #tpu.pipeline_mode<synchronous>, transform_indices = @transform_5, window_bounds = array<i64: 100, 50>}, {pipeline_mode = #tpu.pipeline_mode<synchronous>, transform_indices = @transform_6, window_bounds = array<i64: 1, 50>}, {pipeline_mode = #tpu.pipeline_mode<synchronous>, transform_indices = @transform_7, window_bounds = array<i64: 50, 10>}, {pipeline_mode = #tpu.pipeline_mode<synchronous>, transform_indices = @transform_8, window_bounds = array<i64: 1, 10>}, {pipeline_mode = #tpu.pipeline_mode<synchronous>, transform_indices = @transform_9, window_bounds = array<i64: 10, 8>}, {pipeline_mode = #tpu.pipeline_mode<synchronous>, transform_indices = @transform_10, window_bounds = array<i64: 1, 8>}, {transform_indices = @transform_11, window_bounds = array<i64: 16, 8>}]} {
    %c0 = arith.constant 0 : index
    %c0_0 = arith.constant 0 : index
    %0 = vector.load %arg2[%c0, %c0_0] : memref<4x10xf32, #tpu.memory_space<vmem>>, vector<4x10xf32>
    %c0_1 = arith.constant 0 : index
    %c0_2 = arith.constant 0 : index
    %1 = vector.load %arg3[%c0_1, %c0_2] : memref<1x10xf32, #tpu.memory_space<vmem>>, vector<1x10xf32>
    %c0_3 = arith.constant 0 : index
    %c0_4 = arith.constant 0 : index
    %2 = vector.load %arg4[%c0_3, %c0_4] : memref<10x100xbf16, #tpu.memory_space<vmem>>, vector<10x100xbf16>
    %c0_5 = arith.constant 0 : index
    %c0_6 = arith.constant 0 : index
    %3 = vector.load %arg5[%c0_5, %c0_6] : memref<1x100xf32, #tpu.memory_space<vmem>>, vector<1x100xf32>
    %c0_7 = arith.constant 0 : index
    %c0_8 = arith.constant 0 : index
    %4 = vector.load %arg6[%c0_7, %c0_8] : memref<100x50xbf16, #tpu.memory_space<vmem>>, vector<100x50xbf16>
    %c0_9 = arith.constant 0 : index
    %c0_10 = arith.constant 0 : index
    %5 = vector.load %arg7[%c0_9, %c0_10] : memref<1x50xf32, #tpu.memory_space<vmem>>, vector<1x50xf32>
    %c0_11 = arith.constant 0 : index
    %c0_12 = arith.constant 0 : index
    %6 = vector.load %arg8[%c0_11, %c0_12] : memref<50x10xbf16, #tpu.memory_space<vmem>>, vector<50x10xbf16>
    %c0_13 = arith.constant 0 : index
    %c0_14 = arith.constant 0 : index
    %7 = vector.load %arg9[%c0_13, %c0_14] : memref<1x10xf32, #tpu.memory_space<vmem>>, vector<1x10xf32>
    %c0_15 = arith.constant 0 : index
    %c0_16 = arith.constant 0 : index
    %8 = vector.load %arg10[%c0_15, %c0_16] : memref<10x8xbf16, #tpu.memory_space<vmem>>, vector<10x8xbf16>
    %c0_17 = arith.constant 0 : index
    %c0_18 = arith.constant 0 : index
    %9 = vector.load %arg11[%c0_17, %c0_18] : memref<1x8xf32, #tpu.memory_space<vmem>>, vector<1x8xf32>
    %c0_19 = arith.constant 0 : index
    %c0_20 = arith.constant 0 : index
    %10 = vector.load %arg1[%c0_19, %c0_20] : memref<16x4xf32, #tpu.memory_space<vmem>>, vector<16x4xf32>
    %cst = arith.constant dense<0.000000e+00> : vector<16x10xf32>
    %11 = tpu.matmul %10, %0, %cst {dimension_numbers = #tpu.dot_dimension_numbers<[1], [0], [0], [1], [0, 0, 1, 1], [], []>} : vector<16x4xf32>, vector<4x10xf32>, vector<16x10xf32> -> vector<16x10xf32>
    %12 = vector.broadcast %1 : vector<1x10xf32> to vector<16x10xf32>
    %13 = arith.addf %11, %12 : vector<16x10xf32>
    %cst_21 = arith.constant 0.000000e+00 : f32
    %14 = vector.broadcast %cst_21 : f32 to vector<16x10xf32>
    %15 = arith.maximumf %13, %14 : vector<16x10xf32>
    %16 = arith.truncf %15 : vector<16x10xf32> to vector<16x10xbf16>
    %cst_22 = arith.constant dense<0.000000e+00> : vector<16x100xf32>
    %17 = tpu.matmul %16, %2, %cst_22 {dimension_numbers = #tpu.dot_dimension_numbers<[1], [0], [0], [1], [0, 0, 1, 1], [], []>} : vector<16x10xbf16>, vector<10x100xbf16>, vector<16x100xf32> -> vector<16x100xf32>
    %18 = vector.broadcast %3 : vector<1x100xf32> to vector<16x100xf32>
    %19 = arith.addf %17, %18 : vector<16x100xf32>
    %cst_23 = arith.constant 0.000000e+00 : f32
    %20 = vector.broadcast %cst_23 : f32 to vector<16x100xf32>
    %21 = arith.maximumf %19, %20 : vector<16x100xf32>
    %22 = arith.truncf %21 : vector<16x100xf32> to vector<16x100xbf16>
    %cst_24 = arith.constant dense<0.000000e+00> : vector<16x50xf32>
    %23 = tpu.matmul %22, %4, %cst_24 {dimension_numbers = #tpu.dot_dimension_numbers<[1], [0], [0], [1], [0, 0, 1, 1], [], []>} : vector<16x100xbf16>, vector<100x50xbf16>, vector<16x50xf32> -> vector<16x50xf32>
    %24 = vector.broadcast %5 : vector<1x50xf32> to vector<16x50xf32>
    %25 = arith.addf %23, %24 : vector<16x50xf32>
    %cst_25 = arith.constant 0.000000e+00 : f32
    %26 = vector.broadcast %cst_25 : f32 to vector<16x50xf32>
    %27 = arith.maximumf %25, %26 : vector<16x50xf32>
    %28 = arith.truncf %27 : vector<16x50xf32> to vector<16x50xbf16>
    %cst_26 = arith.constant dense<0.000000e+00> : vector<16x10xf32>
    %29 = tpu.matmul %28, %6, %cst_26 {dimension_numbers = #tpu.dot_dimension_numbers<[1], [0], [0], [1], [0, 0, 1, 1], [], []>} : vector<16x50xbf16>, vector<50x10xbf16>, vector<16x10xf32> -> vector<16x10xf32>
    %30 = vector.broadcast %7 : vector<1x10xf32> to vector<16x10xf32>
    %31 = arith.addf %29, %30 : vector<16x10xf32>
    %cst_27 = arith.constant 0.000000e+00 : f32
    %32 = vector.broadcast %cst_27 : f32 to vector<16x10xf32>
    %33 = arith.maximumf %31, %32 : vector<16x10xf32>
    %34 = arith.truncf %33 : vector<16x10xf32> to vector<16x10xbf16>
    %cst_28 = arith.constant dense<0.000000e+00> : vector<16x8xf32>
    %35 = tpu.matmul %34, %8, %cst_28 {dimension_numbers = #tpu.dot_dimension_numbers<[1], [0], [0], [1], [0, 0, 1, 1], [], []>} : vector<16x10xbf16>, vector<10x8xbf16>, vector<16x8xf32> -> vector<16x8xf32>
    %36 = vector.broadcast %9 : vector<1x8xf32> to vector<16x8xf32>
    %37 = arith.addf %35, %36 : vector<16x8xf32>
    %c0_29 = arith.constant 0 : index
    %c0_30 = arith.constant 0 : index
    %38 = vector.load %arg12[%c0_29, %c0_30] : memref<16x8xf32, #tpu.memory_space<vmem>>, vector<16x8xf32>
    tpu.vector_store %arg12[%c0_29, %c0_30], %37 {strides = array<i32>} : memref<16x8xf32, #tpu.memory_space<vmem>>, vector<16x8xf32>,
    return
  }
  func.func @transform_0(%arg0: i32) -> (i32, i32) {
    %c0_i32 = arith.constant 0 : i32
    %c0_i32_0 = arith.constant 0 : i32
    return %arg0, %c0_i32 : i32, i32
  }
  func.func @transform_1(%arg0: i32) -> (i32, i32) {
    %c0_i32 = arith.constant 0 : i32
    %c0_i32_0 = arith.constant 0 : i32
    %c0_i32_1 = arith.constant 0 : i32
    return %c0_i32, %c0_i32_0 : i32, i32
  }
  func.func @transform_2(%arg0: i32) -> (i32, i32) {
    %c0_i32 = arith.constant 0 : i32
    %c0_i32_0 = arith.constant 0 : i32
    %c0_i32_1 = arith.constant 0 : i32
    return %c0_i32, %c0_i32_0 : i32, i32
  }
  func.func @transform_3(%arg0: i32) -> (i32, i32) {
    %c0_i32 = arith.constant 0 : i32
    %c0_i32_0 = arith.constant 0 : i32
    %c0_i32_1 = arith.constant 0 : i32
    return %c0_i32, %c0_i32_0 : i32, i32
  }
  func.func @transform_4(%arg0: i32) -> (i32, i32) {
    %c0_i32 = arith.constant 0 : i32
    %c0_i32_0 = arith.constant 0 : i32
    %c0_i32_1 = arith.constant 0 : i32
    return %c0_i32, %c0_i32_0 : i32, i32
  }
  func.func @transform_5(%arg0: i32) -> (i32, i32) {
    %c0_i32 = arith.constant 0 : i32
    %c0_i32_0 = arith.constant 0 : i32
    %c0_i32_1 = arith.constant 0 : i32
    return %c0_i32, %c0_i32_0 : i32, i32
  }
  func.func @transform_6(%arg0: i32) -> (i32, i32) {
    %c0_i32 = arith.constant 0 : i32
    %c0_i32_0 = arith.constant 0 : i32
    %c0_i32_1 = arith.constant 0 : i32
    return %c0_i32, %c0_i32_0 : i32, i32
  }
  func.func @transform_7(%arg0: i32) -> (i32, i32) {
    %c0_i32 = arith.constant 0 : i32
    %c0_i32_0 = arith.constant 0 : i32
    %c0_i32_1 = arith.constant 0 : i32
    return %c0_i32, %c0_i32_0 : i32, i32
  }
  func.func @transform_8(%arg0: i32) -> (i32, i32) {
    %c0_i32 = arith.constant 0 : i32
    %c0_i32_0 = arith.constant 0 : i32
    %c0_i32_1 = arith.constant 0 : i32
    return %c0_i32, %c0_i32_0 : i32, i32
  }
  func.func @transform_9(%arg0: i32) -> (i32, i32) {
    %c0_i32 = arith.constant 0 : i32
    %c0_i32_0 = arith.constant 0 : i32
    %c0_i32_1 = arith.constant 0 : i32
    return %c0_i32, %c0_i32_0 : i32, i32
  }
  func.func @transform_10(%arg0: i32) -> (i32, i32) {
    %c0_i32 = arith.constant 0 : i32
    %c0_i32_0 = arith.constant 0 : i32
    %c0_i32_1 = arith.constant 0 : i32
    return %c0_i32, %c0_i32_0 : i32, i32
  }
  func.func @transform_11(%arg0: i32) -> (i32, i32) {
    %c0_i32 = arith.constant 0 : i32
    %c0_i32_0 = arith.constant 0 : i32
    return %arg0, %c0_i32 : i32, i32
  }
}

</mosaic_0001>

<bundles_post_ra>
// kernel: dqn_forward.1
= control target key start
LH: loop header
LB: loop body
LE: loop exit
PB: predicated region body
PF: predicated region fallthrough
CT: control target
= control target key end

     0   :  { %vm84_vm0 = vcmask 1043456   ;;  %vm77_vm1 = vcmask 31744   ;;  %vm181_vm2 = vcmask 1044480   ;;  %v577_v4 = vmov 0.0   ;;  %s734_s1 = inlined_call_operand.vmem [shape: f32[4,10], index: 1, kind: input, shape index: {}]   ;;  %s735_s0 = inlined_call_operand.vmem [shape: f32[16,4], index: 0, kind: input, shape index: {}]   ;;  %s736_s3 = inlined_call_operand.vmem [shape: bf16[10,100], index: 3, kind: input, shape index: {}]   ;;  %s737_s9 = inlined_call_operand.vmem [shape: bf16[10,8], index: 9, kind: input, shape index: {}]   ;;  %s738_s5 = inlined_call_operand.vmem [shape: bf16[100,50], index: 5, kind: input, shape index: {}]   ;;  %s739_s2 = inlined_call_operand.vmem [shape: f32[1,10], index: 2, kind: input, shape index: {}]   ;;  %s740_s7 = inlined_call_operand.vmem [shape: bf16[50,10], index: 7, kind: input, shape index: {}]   ;;  %s741_s4 = inlined_call_operand.vmem [shape: f32[1,100], index: 4, kind: input, shape index: {}]   ;;  %s742_s6 = inlined_call_operand.vmem [shape: f32[1,50], index: 6, kind: input, shape index: {}]   ;;  %s743_s8 = inlined_call_operand.vmem [shape: f32[1,10], index: 8, kind: input, shape index: {}]   ;;  %s744_s10 = inlined_call_operand.vmem [shape: f32[1,8], index: 10, kind: input, shape index: {}]   ;;  %s745_s11 = inlined_call_operand.vmem [shape: f32[16,8], index: 11, kind: output, shape index: {}]  }
   0x1   :  { %v39_v0 = vld [vmem:[%s734_s1] sm:$0xf]  ;;  %v70_v2 = vld [vmem:[%s735_s0 + $0x8] sm:$0xff]  ;;  %520 = vmatprep.subr.bf16.mxu1 %v577_v4  ;;  %vm578_vm3 = vmmov 0   ;;  %v568_v10 = vld [vmem:[%s738_s5 + $0x10] sm:$0xff]   ;;  %vm177_vm4 = vcmask 80896  }
   0x2   :  { %v69_v1 = vld [vmem:[%s735_s0] sm:$0xff]  ;;  %515 = vmatprep.subr.msk.mxu0 %vm84_vm0, %v39_v0  ;;  %522 = vmatprep.mubr.msk.bf16.mxu1 %vm578_vm3, %v577_v4  ;;  %v567_v9 = vld [vmem:[%s738_s5 + $0x8] sm:$0xff]   ;;  %v569_v11 = vld [vmem:[%s738_s5 + $0x18] sm:$0xff]   ;;  %vm278_vm5 = vcmask 1041408   ;;  %vm274_vm6 = vcmask 818176   ;;  %vm357_vm7 = vcmask 1040384  }
   0x3   :  { %517 = vmatprep.mubr.msk.f32.mxu0 %vm77_vm1, %v69_v1  ;;  %516 = vmatpush3.msk.msra.mxu0 %vm84_vm0, %v39_v0  ;;  %v564_v3 = vld [vmem:[%s736_s3] sm:$0x1f]   ;;  %v571_v21 = vld [vmem:[%s738_s5 + $0x28] sm:$0xff]   ;;  %v572_v22 = vld [vmem:[%s738_s5 + $0x30] ss:$0 sps:$4 sm:$0x33]  }
   0x4   :  { %518 = vmatmul.mubr.msk.f32.vlgmr.msra.gmra.mrb[0].mxu0 %vm77_vm1, %v70_v2  ;;  %v183_v5 = vsel %vm181_vm2, %v564_v3, 0  ;;  %526 = vmatprep.subr.bf16.mxu0 %v577_v4  ;;  %v565_v6 = vld [vmem:[%s737_s9] sm:$0x1f]   ;;  %v280_v23 = vsel %vm278_vm5, %v572_v22, 0  ;;  %v574_v25 = vld [vmem:[%s740_s7 + $0x8] sm:$0xff]   ;;  %v575_v36 = vld [vmem:[%s740_s7 + $0x10] sm:$0xff]  }
   0x5   :  { %521 = vmatpush3.bf16.msra.mxu1 %v183_v5  ;;  %540 = vmatprep.mubr.msk.bf16.mxu0 %vm578_vm3, %v577_v4  ;;  %v661_v7 = vsel %vm181_vm2, %v565_v6, 0  ;;  %v566_v8 = vld [vmem:[%s738_s5] sm:$0xff]   ;;  %v576_v37 = vld [vmem:[%s740_s7 + $0x18] ss:$0 sps:$4 sm:$0x11]   ;;  %vm353_vm8 = vcmask 408576  }
   0x6   :  { %544 = vmatprep.subr.bf16.mxu1 %v577_v4  ;;  %527 = vmatpush3.bf16.msra.mxu0 %v566_v8  ;;  %v570_v12 = vld [vmem:[%s738_s5 + $0x20] sm:$0xff]   ;;  %v359_v38 = vsel %vm357_vm7, %v576_v37, 0  ;;  %vm463_vm9 = vcmask 64512  }
   0x7   :  { %528 = vmatprep.subr.bf16.mxu0 %v577_v4  ;;  %v470_v13 = vld [vmem:[%s739_s2] ss:$0 sm:$0xff] }
   0x8   :  { %v573_v24 = vld [vmem:[%s740_s7] sm:$0xff]  }
   0x9   :  { %v474_v26 = vld [vmem:[%s741_s4] ss:$0 sm:$0xff] }
   0xa   :  { %529 = vmatpush3.bf16.msra.mxu0 %v567_v9  ;;  %v477_v39 = vld [vmem:[%s742_s6] ss:$0 sm:$0xff] }
   0xb   :  { %530 = vmatprep.subr.bf16.mxu0 %v577_v4  ;;  %v486_v49 = vld [vmem:[%s743_s8] ss:$0 sm:$0xff] }
   0xc   :  { %v492_v59 = vld [vmem:[%s744_s10] ss:$0 sm:$0xff] }
   0xe   :  { %531 = vmatpush3.bf16.msra.mxu0 %v568_v10 }
   0xf   :  { %532 = vmatprep.subr.bf16.mxu0 %v577_v4 }
  0x12   :  { %533 = vmatpush3.bf16.msra.mxu0 %v569_v11 }
  0x13   :  { %534 = vmatprep.subr.bf16.mxu0 %v577_v4 }
  0x16   :  { %535 = vmatpush3.bf16.msra.mxu0 %v570_v12 }
  0x17   :  { %536 = vmatprep.subr.bf16.mxu0 %v577_v4 }
  0x1a   :  { %537 = vmatpush3.bf16.msra.mxu0 %v571_v21 }
  0x1b   :  { %538 = vmatprep.subr.bf16.mxu0 %v577_v4 }
  0x1e   :  { %539 = vmatpush3.bf16.msra.mxu0 %v280_v23 }
  0xd7   :  { %v519_v14 = vpop.f32.mrb[0].mxu0 }
  0xd8   :  { %v160_v15 = vadd.f32 %v519_v14, %v470_v13  ;;  %v154_v16 = vpop.f32.mrb[1].mxu0 }
  0xd9   :  { %v155_v17 = vadd.f32 %v470_v13, %v154_v16 }
  0xda   :  { %v164_v18 = vmax.f32 %v160_v15, 0.0 }
  0xdb   :  { %v163_v19 = vmax.f32 %v155_v17, 0.0 }
  0xdd   :  { %v165_v20 = vpack.c.bf16 %v164_v18, %v163_v19 }
  0xdf   :  { %523 = vmatmul.mubr.msk.bf16.vlgmr.msra.gmra.mrb[0].mxu1 %vm177_vm4, %v165_v20 }
  0xe0   :  { %552 = vmatprep.mubr.msk.bf16.mxu1 %vm578_vm3, %v577_v4  ;;  %545 = vmatpush3.bf16.msra.mxu1 %v573_v24 }
  0xe1   :  { %546 = vmatprep.subr.bf16.mxu1 %v577_v4 }
  0xe4   :  { %547 = vmatpush3.bf16.msra.mxu1 %v574_v25 }
  0xe5   :  { %548 = vmatprep.subr.bf16.mxu1 %v577_v4 }
  0xe8   :  { %549 = vmatpush3.bf16.msra.mxu1 %v575_v36 }
  0xe9   :  { %550 = vmatprep.subr.bf16.mxu1 %v577_v4 }
  0xec   :  { %551 = vmatpush3.bf16.msra.mxu1 %v359_v38 }
  0xed   :  { %556 = vmatprep.subr.bf16.mxu1 %v577_v4 }
 0x1b2   :  { %v219_v27 = vpop.f32.mrb[0].mxu1 }
 0x1b3   :  { %v220_v28 = vadd.f32 %v474_v26, %v219_v27  ;;  %v524_v29 = vpop.f32.mrb[1].mxu1 }
 0x1b4   :  { %v222_v30 = vpop.f32.mrb[2].mxu1 }
 0x1b5   :  { %v223_v31 = vadd.f32 %v474_v26, %v222_v30  ;;  %v525_v32 = vpop.f32.mrb[3].mxu1  ;;  %v226_v33 = vmax.f32 %v220_v28, 0.0 }
 0x1b7   :  { %v227_v34 = vmax.f32 %v223_v31, 0.0 }
 0x1b9   :  { %v228_v35 = vpack.c.bf16 %v227_v34, %v226_v33 }
 0x1bb   :  { %541 = vmatmul.mubr.msk.bf16.vlgmr.msra.gmra.mrb[4].mxu0 %vm274_vm6, %v228_v35 }
 0x28e   :  { %v316_v40 = vpop.f32.mrb[4].mxu0 }
 0x28f   :  { %v317_v41 = vadd.f32 %v477_v39, %v316_v40  ;;  %v542_v42 = vpop.f32.mrb[5].mxu0 }
 0x290   :  { %v319_v43 = vpop.f32.mrb[6].mxu0 }
 0x291   :  { %v320_v44 = vadd.f32 %v477_v39, %v319_v43  ;;  %v543_v45 = vpop.f32.mrb[7].mxu0  ;;  %v323_v46 = vmax.f32 %v317_v41, 0.0 }
 0x293   :  { %v324_v47 = vmax.f32 %v320_v44, 0.0 }
 0x295   :  { %v325_v48 = vpack.c.bf16 %v324_v47, %v323_v46 }
 0x297   :  { %553 = vmatmul.mubr.msk.bf16.vlgmr.msra.gmra.mrb[4].mxu1 %vm353_vm8, %v325_v48 }
 0x298   :  { %557 = vmatpush3.bf16.msra.mxu1 %v661_v7  ;;  %558 = vmatprep.mubr.msk.bf16.mxu1 %vm578_vm3, %v577_v4 }
 0x36a   :  { %v395_v50 = vpop.f32.mrb[4].mxu1 }
 0x36b   :  { %v396_v51 = vadd.f32 %v486_v49, %v395_v50  ;;  %v554_v52 = vpop.f32.mrb[5].mxu1 }
 0x36c   :  { %v398_v53 = vpop.f32.mrb[6].mxu1 }
 0x36d   :  { %v399_v54 = vadd.f32 %v486_v49, %v398_v53  ;;  %v555_v55 = vpop.f32.mrb[7].mxu1  ;;  %v402_v56 = vmax.f32 %v396_v51, 0.0 }
 0x36f   :  { %v403_v57 = vmax.f32 %v399_v54, 0.0 }
 0x371   :  { %v404_v58 = vpack.c.bf16 %v403_v57, %v402_v56 }
 0x373   :  { %559 = vmatmul.mubr.msk.bf16.vlgmr.msra.gmra.mrb[8].mxu1 %vm177_vm4, %v404_v58 }
 0x446   :  { %v456_v60 = vpop.f32.mrb[8].mxu1 }
 0x447   :  { %v457_v61 = vadd.f32 %v492_v59, %v456_v60  ;;  %v560_v62 = vpop.f32.mrb[9].mxu1 }
 0x448   :  { %v459_v63 = vpop.f32.mrb[10].mxu1 }
 0x449   :  { %464 = vst.msk [vmem:[%s745_s11] sm:$0xff] %vm463_vm9, %v457_v61  ;;  %v460_v0 = vadd.f32 %v492_v59, %v459_v63  ;;  %v561_v1 = vpop.f32.mrb[11].mxu1 }
 0x44b   :  { %465 = vst.msk [vmem:[%s745_s11 + $0x8] sm:$0xff] %vm463_vm9, %v460_v0 }

</bundles_post_ra>
